<compile_context>
chip_gen: v6e
topology: v6e:2x2x1
jax: 0.10.0
libtpu: 0.0.40
codegen_flags: <defaults>
</compile_context>

<pallas_src>
import math

import jax
import jax.numpy as jnp
import numpy as np
from jax import lax
from jax.experimental import pallas as pl
from jax.experimental.pallas import tpu as pltpu


# ----------------------------- config (small) -----------------------------
BATCH = 2
SEQ = 8
HIDDEN = 32
NUM_HEADS = 4
HEAD_DIM = HIDDEN // NUM_HEADS
ALPHA = 32.0  # CogView PB-Relax alpha (algebraic no-op with max-subtraction)


# ------------------------- one-time parameter packing -------------------------
def pack_qkv_params(params, head_dim):
    """Pack wq|wk|wv -> (H, 3H) and bq|bk|bv -> (1, 3H), folding the
    1/sqrt(head_dim) query scale into the Q columns.  Call once at setup."""
    inv_sqrt_d = 1.0 / math.sqrt(head_dim)
    wqkv = jnp.concatenate(
        [params["wq"] * inv_sqrt_d, params["wk"], params["wv"]], axis=1)
    bqkv = jnp.concatenate(
        [params["bq"] * inv_sqrt_d, params["bk"], params["bv"]], axis=1)
    return wqkv, bqkv


# --------------------------- fused forward kernel ---------------------------
def make_fused_kernel(batch, seq, num_heads, head_dim, hidden):
    inv_sqrt_d = 1.0 / math.sqrt(head_dim)

    def kernel(x_ref, wqkv_ref, bqkv_ref, rel_ref, rel2d_ref, mask_ref,
               out_ref):
        # Single fused QKV projection for the whole batch: one MXU call,
        # (B*S, H) @ (H, 3H) + (1, 3H).  Query columns are pre-scaled.
        qkv = jnp.dot(x_ref[...], wqkv_ref[...],
                      preferred_element_type=jnp.float32) + bqkv_ref[...]

        # Hoisted bias: (rel_pos + rel_2d_pos)/sqrt(d) + additive key mask,
        # computed once over (B, NH, S, S) instead of per head.
        bias_all = ((rel_ref[...] + rel2d_ref[...]) * inv_sqrt_d
                    + mask_ref[...][:, None, None, :])

        # Unrolled (batch, head) loop; 8 tiny iterations at this size.
        # TODO(synk): at production sizes stage qkv head-major in VMEM scratch
        #             to avoid the sub-128-lane q/k/v slices below.
        for b in range(batch):
            r0 = b * seq
            qkv_b = qkv[r0:r0 + seq, :]                       # (S, 3H)
            for h in range(num_heads):
                lo = h * head_dim
                qh = qkv_b[:, lo:lo + head_dim]               # (S, D), pre-scaled
                kh = qkv_b[:, hidden + lo:hidden + lo + head_dim]
                vh = qkv_b[:, 2 * hidden + lo:2 * hidden + lo + head_dim]

                # q @ k^T without materializing a transpose.
                scores = lax.dot_general(qh, kh, (((1,), (1,)), ((), ())),
                                         preferred_element_type=jnp.float32)
                scores = scores + bias_all[b, h]              # (S, S)

                # PB-Relax softmax == standard max-subtracted softmax
                # (exact in f32 for power-of-two alpha).  Exact divide.
                m = jnp.max(scores, axis=-1, keepdims=True)
                e = jnp.exp(scores - m)
                probs = e / jnp.sum(e, axis=-1, keepdims=True)

                # Direct per-head store into the lane-dense (B, S, H) output.
                out_ref[b, :, lo:lo + head_dim] = jnp.dot(
                    probs, vh, preferred_element_type=jnp.float32)

    return kernel


@jax.jit
def layoutlmv3_self_attention(hidden_states, wqkv, bqkv, attention_mask,
                              rel_pos, rel_2d_pos):
    B, S, H = hidden_states.shape
    x2d = hidden_states.reshape(B * S, H)

    vmem = pl.BlockSpec(memory_space=pltpu.MemorySpace.VMEM)
    return pl.pallas_call(
        make_fused_kernel(B, S, NUM_HEADS, HEAD_DIM, H),
        out_shape=jax.ShapeDtypeStruct((B, S, H), jnp.float32),
        in_specs=[vmem] * 6,
        out_specs=vmem,
    )(x2d, wqkv, bqkv, rel_pos, rel_2d_pos, attention_mask)


# ---------------------------- pure-JAX reference ----------------------------
def reference(hidden_states, params, attention_mask, rel_pos, rel_2d_pos):
    B, S, H = hidden_states.shape
    q = hidden_states @ params["wq"] + params["bq"][0]
    k = hidden_states @ params["wk"] + params["bk"][0]
    v = hidden_states @ params["wv"] + params["bv"][0]

    def split_heads(x):
        return x.reshape(B, S, NUM_HEADS, HEAD_DIM).transpose(0, 2, 1, 3)

    q, k, v = split_heads(q), split_heads(k), split_heads(v)
    scores = jnp.einsum("bhqd,bhkd->bhqk", q / math.sqrt(HEAD_DIM), k)
    scores = scores + (rel_pos + rel_2d_pos) / math.sqrt(HEAD_DIM)
    scores = scores + attention_mask[:, None, None, :]
    # CogView / PB-Relax softmax (as in the PyTorch module).
    scaled = scores / ALPHA
    m = jnp.max(scaled, axis=-1, keepdims=True)
    probs = jax.nn.softmax((scaled - m) * ALPHA, axis=-1)
    ctx = jnp.einsum("bhqk,bhkd->bhqd", probs, v)
    return ctx.transpose(0, 2, 1, 3).reshape(B, S, H)


# ----------------------------------- main -----------------------------------
if __name__ == "__main__":
    key = jax.random.PRNGKey(0)
    keys = jax.random.split(key, 10)

    hidden_states = jax.random.normal(keys[0], (BATCH, SEQ, HIDDEN), jnp.float32)

    scale = 1.0 / math.sqrt(HIDDEN)
    params = {
        "wq": jax.random.normal(keys[1], (HIDDEN, HIDDEN), jnp.float32) * scale,
        "bq": jax.random.normal(keys[2], (1, HIDDEN), jnp.float32) * 0.02,
        "wk": jax.random.normal(keys[3], (HIDDEN, HIDDEN), jnp.float32) * scale,
        "bk": jax.random.normal(keys[4], (1, HIDDEN), jnp.float32) * 0.02,
        "wv": jax.random.normal(keys[5], (HIDDEN, HIDDEN), jnp.float32) * scale,
        "bv": jax.random.normal(keys[6], (1, HIDDEN), jnp.float32) * 0.02,
    }

    # relative and spatial attention biases (has_relative_attention_bias and
    # has_spatial_attention_bias both True)
    rel_pos = jax.random.normal(keys[7], (BATCH, NUM_HEADS, SEQ, SEQ), jnp.float32)
    rel_2d_pos = jax.random.normal(keys[8], (BATCH, NUM_HEADS, SEQ, SEQ), jnp.float32)

    # additive attention mask: last two key positions of batch 1 masked out
    attention_mask = jnp.zeros((BATCH, SEQ), jnp.float32)
    attention_mask = attention_mask.at[1, -2:].set(-10000.0)

    # One-time weight packing (hoisted out of the per-call path).
    wqkv, bqkv = pack_qkv_params(params, HEAD_DIM)

    out = layoutlmv3_self_attention(hidden_states, wqkv, bqkv, attention_mask,
                                    rel_pos, rel_2d_pos)
    out = jax.block_until_ready(out)

    ref = reference(hidden_states, params, attention_mask, rel_pos, rel_2d_pos)
    # Exact softmax divide restored -> near-f32 agreement (slack only for MXU
    # accumulation-order and folded query-scale rounding differences).
    np.testing.assert_allclose(np.asarray(out), np.asarray(ref),
                               rtol=1e-4, atol=1e-5)
    print("KERNEL_OK")
</pallas_src>

<mosaic_0001>
module attributes {stable_mosaic.version = 11 : i64} {
  func.func @kernel(%arg0: memref<16x32xf32, #tpu.memory_space<vmem>>, %arg1: memref<32x96xf32, #tpu.memory_space<vmem>>, %arg2: memref<1x96xf32, #tpu.memory_space<vmem>>, %arg3: memref<2x4x8x8xf32, #tpu.memory_space<vmem>>, %arg4: memref<2x4x8x8xf32, #tpu.memory_space<vmem>>, %arg5: memref<2x8xf32, #tpu.memory_space<vmem>>, %arg6: memref<2x8x32xf32, #tpu.memory_space<vmem>>) attributes {dimension_semantics = [], scalar_prefetch = 0 : i64, scratch_operands = 0 : i64, tpu.core_type = #tpu.core_type<tc>} {
    %c0 = arith.constant 0 : index
    %c0_0 = arith.constant 0 : index
    %0 = vector.load %arg0[%c0, %c0_0] : memref<16x32xf32, #tpu.memory_space<vmem>>, vector<16x32xf32>
    %c0_1 = arith.constant 0 : index
    %c0_2 = arith.constant 0 : index
    %1 = vector.load %arg1[%c0_1, %c0_2] : memref<32x96xf32, #tpu.memory_space<vmem>>, vector<32x96xf32>
    %cst = arith.constant dense<0.000000e+00> : vector<16x96xf32>
    %2 = tpu.matmul %0, %1, %cst {dimension_numbers = #tpu.dot_dimension_numbers<[1], [0], [0], [1], [0, 0, 1, 1], [], []>} : vector<16x32xf32>, vector<32x96xf32>, vector<16x96xf32> -> vector<16x96xf32>
    %c0_3 = arith.constant 0 : index
    %c0_4 = arith.constant 0 : index
    %3 = vector.load %arg2[%c0_3, %c0_4] : memref<1x96xf32, #tpu.memory_space<vmem>>, vector<1x96xf32>
    %4 = vector.broadcast %3 : vector<1x96xf32> to vector<16x96xf32>
    %5 = arith.addf %2, %4 : vector<16x96xf32>
    %c0_5 = arith.constant 0 : index
    %c0_6 = arith.constant 0 : index
    %c0_7 = arith.constant 0 : index
    %c0_8 = arith.constant 0 : index
    %6 = vector.load %arg3[%c0_5, %c0_6, %c0_7, %c0_8] : memref<2x4x8x8xf32, #tpu.memory_space<vmem>>, vector<2x4x8x8xf32>
    %c0_9 = arith.constant 0 : index
    %c0_10 = arith.constant 0 : index
    %c0_11 = arith.constant 0 : index
    %c0_12 = arith.constant 0 : index
    %7 = vector.load %arg4[%c0_9, %c0_10, %c0_11, %c0_12] : memref<2x4x8x8xf32, #tpu.memory_space<vmem>>, vector<2x4x8x8xf32>
    %8 = arith.addf %6, %7 : vector<2x4x8x8xf32>
    %cst_13 = arith.constant 0.353553385 : f32
    %9 = vector.broadcast %cst_13 : f32 to vector<2x4x8x8xf32>
    %10 = arith.mulf %8, %9 : vector<2x4x8x8xf32>
    %c0_14 = arith.constant 0 : index
    %c0_15 = arith.constant 0 : index
    %11 = vector.load %arg5[%c0_14, %c0_15] : memref<2x8xf32, #tpu.memory_space<vmem>>, vector<2x8xf32>
    %12 = vector.shape_cast %11 : vector<2x8xf32> to vector<2x1x1x8xf32>
    %13 = vector.broadcast %12 : vector<2x1x1x8xf32> to vector<2x4x8x8xf32>
    %14 = arith.addf %10, %13 : vector<2x4x8x8xf32>
    %15 = vector.extract_strided_slice %5 {offsets = [0, 0], sizes = [8, 96], strides = [1, 1]} : vector<16x96xf32> to vector<8x96xf32>
    %16 = vector.extract_strided_slice %15 {offsets = [0, 0], sizes = [8, 8], strides = [1, 1]} : vector<8x96xf32> to vector<8x8xf32>
    %17 = vector.extract_strided_slice %15 {offsets = [0, 32], sizes = [8, 8], strides = [1, 1]} : vector<8x96xf32> to vector<8x8xf32>
    %18 = vector.extract_strided_slice %15 {offsets = [0, 64], sizes = [8, 8], strides = [1, 1]} : vector<8x96xf32> to vector<8x8xf32>
    %cst_16 = arith.constant dense<0.000000e+00> : vector<8x8xf32>
    %19 = tpu.matmul %16, %17, %cst_16 {dimension_numbers = #tpu.dot_dimension_numbers<[1], [1], [0], [0], [0, 0, 1, 0], [], []>} : vector<8x8xf32>, vector<8x8xf32>, vector<8x8xf32> -> vector<8x8xf32>
    %20 = vector.extract_strided_slice %14 {offsets = [0, 0, 0, 0], sizes = [1, 1, 8, 8], strides = [1, 1, 1, 1]} : vector<2x4x8x8xf32> to vector<1x1x8x8xf32>
    %21 = vector.shape_cast %20 : vector<1x1x8x8xf32> to vector<8x8xf32>
    %22 = arith.addf %19, %21 : vector<8x8xf32>
    %cst_17 = arith.constant dense<0xFF800000> : vector<8xf32>
    %23 = vector.multi_reduction <maximumf>, %22, %cst_17 [1] : vector<8x8xf32> to vector<8xf32>
    %24 = vector.shape_cast %23 : vector<8xf32> to vector<8x1xf32>
    %25 = vector.broadcast %24 : vector<8x1xf32> to vector<8x8xf32>
    %26 = arith.subf %22, %25 : vector<8x8xf32>
    %27 = math.exp %26 : vector<8x8xf32>
    %cst_18 = arith.constant dense<0.000000e+00> : vector<8xf32>
    %28 = vector.multi_reduction <add>, %27, %cst_18 [1] : vector<8x8xf32> to vector<8xf32>
    %29 = vector.shape_cast %28 : vector<8xf32> to vector<8x1xf32>
    %30 = vector.broadcast %29 : vector<8x1xf32> to vector<8x8xf32>
    %31 = arith.divf %27, %30 : vector<8x8xf32>
    %cst_19 = arith.constant dense<0.000000e+00> : vector<8x8xf32>
    %32 = tpu.matmul %31, %18, %cst_19 {dimension_numbers = #tpu.dot_dimension_numbers<[1], [0], [0], [1], [0, 0, 1, 1], [], []>} : vector<8x8xf32>, vector<8x8xf32>, vector<8x8xf32> -> vector<8x8xf32>
    %c0_20 = arith.constant 0 : index
    %c0_21 = arith.constant 0 : index
    %c0_22 = arith.constant 0 : index
    %33 = vector.load %arg6[%c0_20, %c0_21, %c0_22] : memref<2x8x32xf32, #tpu.memory_space<vmem>>, vector<1x8x8xf32>
    %34 = vector.shape_cast %33 : vector<1x8x8xf32> to vector<8x8xf32>
    %35 = vector.shape_cast %32 : vector<8x8xf32> to vector<1x8x8xf32>
    tpu.vector_store %arg6[%c0_20, %c0_21, %c0_22], %35 {strides = array<i32>} : memref<2x8x32xf32, #tpu.memory_space<vmem>>, vector<1x8x8xf32>,
    %36 = vector.extract_strided_slice %15 {offsets = [0, 8], sizes = [8, 8], strides = [1, 1]} : vector<8x96xf32> to vector<8x8xf32>
    %37 = vector.extract_strided_slice %15 {offsets = [0, 40], sizes = [8, 8], strides = [1, 1]} : vector<8x96xf32> to vector<8x8xf32>
    %38 = vector.extract_strided_slice %15 {offsets = [0, 72], sizes = [8, 8], strides = [1, 1]} : vector<8x96xf32> to vector<8x8xf32>
    %cst_23 = arith.constant dense<0.000000e+00> : vector<8x8xf32>
    %39 = tpu.matmul %36, %37, %cst_23 {dimension_numbers = #tpu.dot_dimension_numbers<[1], [1], [0], [0], [0, 0, 1, 0], [], []>} : vector<8x8xf32>, vector<8x8xf32>, vector<8x8xf32> -> vector<8x8xf32>
    %40 = vector.extract_strided_slice %14 {offsets = [0, 1, 0, 0], sizes = [1, 1, 8, 8], strides = [1, 1, 1, 1]} : vector<2x4x8x8xf32> to vector<1x1x8x8xf32>
    %41 = vector.shape_cast %40 : vector<1x1x8x8xf32> to vector<8x8xf32>
    %42 = arith.addf %39, %41 : vector<8x8xf32>
    %cst_24 = arith.constant dense<0xFF800000> : vector<8xf32>
    %43 = vector.multi_reduction <maximumf>, %42, %cst_24 [1] : vector<8x8xf32> to vector<8xf32>
    %44 = vector.shape_cast %43 : vector<8xf32> to vector<8x1xf32>
    %45 = vector.broadcast %44 : vector<8x1xf32> to vector<8x8xf32>
    %46 = arith.subf %42, %45 : vector<8x8xf32>
    %47 = math.exp %46 : vector<8x8xf32>
    %cst_25 = arith.constant dense<0.000000e+00> : vector<8xf32>
    %48 = vector.multi_reduction <add>, %47, %cst_25 [1] : vector<8x8xf32> to vector<8xf32>
    %49 = vector.shape_cast %48 : vector<8xf32> to vector<8x1xf32>
    %50 = vector.broadcast %49 : vector<8x1xf32> to vector<8x8xf32>
    %51 = arith.divf %47, %50 : vector<8x8xf32>
    %cst_26 = arith.constant dense<0.000000e+00> : vector<8x8xf32>
    %52 = tpu.matmul %51, %38, %cst_26 {dimension_numbers = #tpu.dot_dimension_numbers<[1], [0], [0], [1], [0, 0, 1, 1], [], []>} : vector<8x8xf32>, vector<8x8xf32>, vector<8x8xf32> -> vector<8x8xf32>
    %c0_27 = arith.constant 0 : index
    %c0_28 = arith.constant 0 : index
    %c8 = arith.constant 8 : index
    %53 = vector.load %arg6[%c0_27, %c0_28, %c8] : memref<2x8x32xf32, #tpu.memory_space<vmem>>, vector<1x8x8xf32>
    %54 = vector.shape_cast %53 : vector<1x8x8xf32> to vector<8x8xf32>
    %55 = vector.shape_cast %52 : vector<8x8xf32> to vector<1x8x8xf32>
    tpu.vector_store %arg6[%c0_27, %c0_28, %c8], %55 {strides = array<i32>} : memref<2x8x32xf32, #tpu.memory_space<vmem>>, vector<1x8x8xf32>,
    %56 = vector.extract_strided_slice %15 {offsets = [0, 16], sizes = [8, 8], strides = [1, 1]} : vector<8x96xf32> to vector<8x8xf32>
    %57 = vector.extract_strided_slice %15 {offsets = [0, 48], sizes = [8, 8], strides = [1, 1]} : vector<8x96xf32> to vector<8x8xf32>
    %58 = vector.extract_strided_slice %15 {offsets = [0, 80], sizes = [8, 8], strides = [1, 1]} : vector<8x96xf32> to vector<8x8xf32>
    %cst_29 = arith.constant dense<0.000000e+00> : vector<8x8xf32>
    %59 = tpu.matmul %56, %57, %cst_29 {dimension_numbers = #tpu.dot_dimension_numbers<[1], [1], [0], [0], [0, 0, 1, 0], [], []>} : vector<8x8xf32>, vector<8x8xf32>, vector<8x8xf32> -> vector<8x8xf32>
    %60 = vector.extract_strided_slice %14 {offsets = [0, 2, 0, 0], sizes = [1, 1, 8, 8], strides = [1, 1, 1, 1]} : vector<2x4x8x8xf32> to vector<1x1x8x8xf32>
    %61 = vector.shape_cast %60 : vector<1x1x8x8xf32> to vector<8x8xf32>
    %62 = arith.addf %59, %61 : vector<8x8xf32>
    %cst_30 = arith.constant dense<0xFF800000> : vector<8xf32>
    %63 = vector.multi_reduction <maximumf>, %62, %cst_30 [1] : vector<8x8xf32> to vector<8xf32>
    %64 = vector.shape_cast %63 : vector<8xf32> to vector<8x1xf32>
    %65 = vector.broadcast %64 : vector<8x1xf32> to vector<8x8xf32>
    %66 = arith.subf %62, %65 : vector<8x8xf32>
    %67 = math.exp %66 : vector<8x8xf32>
    %cst_31 = arith.constant dense<0.000000e+00> : vector<8xf32>
    %68 = vector.multi_reduction <add>, %67, %cst_31 [1] : vector<8x8xf32> to vector<8xf32>
    %69 = vector.shape_cast %68 : vector<8xf32> to vector<8x1xf32>
    %70 = vector.broadcast %69 : vector<8x1xf32> to vector<8x8xf32>
    %71 = arith.divf %67, %70 : vector<8x8xf32>
    %cst_32 = arith.constant dense<0.000000e+00> : vector<8x8xf32>
    %72 = tpu.matmul %71, %58, %cst_32 {dimension_numbers = #tpu.dot_dimension_numbers<[1], [0], [0], [1], [0, 0, 1, 1], [], []>} : vector<8x8xf32>, vector<8x8xf32>, vector<8x8xf32> -> vector<8x8xf32>
    %c0_33 = arith.constant 0 : index
    %c0_34 = arith.constant 0 : index
    %c16 = arith.constant 16 : index
    %73 = vector.load %arg6[%c0_33, %c0_34, %c16] : memref<2x8x32xf32, #tpu.memory_space<vmem>>, vector<1x8x8xf32>
    %74 = vector.shape_cast %73 : vector<1x8x8xf32> to vector<8x8xf32>
    %75 = vector.shape_cast %72 : vector<8x8xf32> to vector<1x8x8xf32>
    tpu.vector_store %arg6[%c0_33, %c0_34, %c16], %75 {strides = array<i32>} : memref<2x8x32xf32, #tpu.memory_space<vmem>>, vector<1x8x8xf32>,
    %76 = vector.extract_strided_slice %15 {offsets = [0, 24], sizes = [8, 8], strides = [1, 1]} : vector<8x96xf32> to vector<8x8xf32>
    %77 = vector.extract_strided_slice %15 {offsets = [0, 56], sizes = [8, 8], strides = [1, 1]} : vector<8x96xf32> to vector<8x8xf32>
    %78 = vector.extract_strided_slice %15 {offsets = [0, 88], sizes = [8, 8], strides = [1, 1]} : vector<8x96xf32> to vector<8x8xf32>
    %cst_35 = arith.constant dense<0.000000e+00> : vector<8x8xf32>
    %79 = tpu.matmul %76, %77, %cst_35 {dimension_numbers = #tpu.dot_dimension_numbers<[1], [1], [0], [0], [0, 0, 1, 0], [], []>} : vector<8x8xf32>, vector<8x8xf32>, vector<8x8xf32> -> vector<8x8xf32>
    %80 = vector.extract_strided_slice %14 {offsets = [0, 3, 0, 0], sizes = [1, 1, 8, 8], strides = [1, 1, 1, 1]} : vector<2x4x8x8xf32> to vector<1x1x8x8xf32>
    %81 = vector.shape_cast %80 : vector<1x1x8x8xf32> to vector<8x8xf32>
    %82 = arith.addf %79, %81 : vector<8x8xf32>
    %cst_36 = arith.constant dense<0xFF800000> : vector<8xf32>
    %83 = vector.multi_reduction <maximumf>, %82, %cst_36 [1] : vector<8x8xf32> to vector<8xf32>
    %84 = vector.shape_cast %83 : vector<8xf32> to vector<8x1xf32>
    %85 = vector.broadcast %84 : vector<8x1xf32> to vector<8x8xf32>
    %86 = arith.subf %82, %85 : vector<8x8xf32>
    %87 = math.exp %86 : vector<8x8xf32>
    %cst_37 = arith.constant dense<0.000000e+00> : vector<8xf32>
    %88 = vector.multi_reduction <add>, %87, %cst_37 [1] : vector<8x8xf32> to vector<8xf32>
    %89 = vector.shape_cast %88 : vector<8xf32> to vector<8x1xf32>
    %90 = vector.broadcast %89 : vector<8x1xf32> to vector<8x8xf32>
    %91 = arith.divf %87, %90 : vector<8x8xf32>
    %cst_38 = arith.constant dense<0.000000e+00> : vector<8x8xf32>
    %92 = tpu.matmul %91, %78, %cst_38 {dimension_numbers = #tpu.dot_dimension_numbers<[1], [0], [0], [1], [0, 0, 1, 1], [], []>} : vector<8x8xf32>, vector<8x8xf32>, vector<8x8xf32> -> vector<8x8xf32>
    %c0_39 = arith.constant 0 : index
    %c0_40 = arith.constant 0 : index
    %c24 = arith.constant 24 : index
    %93 = vector.load %arg6[%c0_39, %c0_40, %c24] : memref<2x8x32xf32, #tpu.memory_space<vmem>>, vector<1x8x8xf32>
    %94 = vector.shape_cast %93 : vector<1x8x8xf32> to vector<8x8xf32>
    %95 = vector.shape_cast %92 : vector<8x8xf32> to vector<1x8x8xf32>
    tpu.vector_store %arg6[%c0_39, %c0_40, %c24], %95 {strides = array<i32>} : memref<2x8x32xf32, #tpu.memory_space<vmem>>, vector<1x8x8xf32>,
    %96 = vector.extract_strided_slice %5 {offsets = [8, 0], sizes = [8, 96], strides = [1, 1]} : vector<16x96xf32> to vector<8x96xf32>
    %97 = vector.extract_strided_slice %96 {offsets = [0, 0], sizes = [8, 8], strides = [1, 1]} : vector<8x96xf32> to vector<8x8xf32>
    %98 = vector.extract_strided_slice %96 {offsets = [0, 32], sizes = [8, 8], strides = [1, 1]} : vector<8x96xf32> to vector<8x8xf32>
    %99 = vector.extract_strided_slice %96 {offsets = [0, 64], sizes = [8, 8], strides = [1, 1]} : vector<8x96xf32> to vector<8x8xf32>
    %cst_41 = arith.constant dense<0.000000e+00> : vector<8x8xf32>
    %100 = tpu.matmul %97, %98, %cst_41 {dimension_numbers = #tpu.dot_dimension_numbers<[1], [1], [0], [0], [0, 0, 1, 0], [], []>} : vector<8x8xf32>, vector<8x8xf32>, vector<8x8xf32> -> vector<8x8xf32>
    %101 = vector.extract_strided_slice %14 {offsets = [1, 0, 0, 0], sizes = [1, 1, 8, 8], strides = [1, 1, 1, 1]} : vector<2x4x8x8xf32> to vector<1x1x8x8xf32>
    %102 = vector.shape_cast %101 : vector<1x1x8x8xf32> to vector<8x8xf32>
    %103 = arith.addf %100, %102 : vector<8x8xf32>
    %cst_42 = arith.constant dense<0xFF800000> : vector<8xf32>
    %104 = vector.multi_reduction <maximumf>, %103, %cst_42 [1] : vector<8x8xf32> to vector<8xf32>
    %105 = vector.shape_cast %104 : vector<8xf32> to vector<8x1xf32>
    %106 = vector.broadcast %105 : vector<8x1xf32> to vector<8x8xf32>
    %107 = arith.subf %103, %106 : vector<8x8xf32>
    %108 = math.exp %107 : vector<8x8xf32>
    %cst_43 = arith.constant dense<0.000000e+00> : vector<8xf32>
    %109 = vector.multi_reduction <add>, %108, %cst_43 [1] : vector<8x8xf32> to vector<8xf32>
    %110 = vector.shape_cast %109 : vector<8xf32> to vector<8x1xf32>
    %111 = vector.broadcast %110 : vector<8x1xf32> to vector<8x8xf32>
    %112 = arith.divf %108, %111 : vector<8x8xf32>
    %cst_44 = arith.constant dense<0.000000e+00> : vector<8x8xf32>
    %113 = tpu.matmul %112, %99, %cst_44 {dimension_numbers = #tpu.dot_dimension_numbers<[1], [0], [0], [1], [0, 0, 1, 1], [], []>} : vector<8x8xf32>, vector<8x8xf32>, vector<8x8xf32> -> vector<8x8xf32>
    %c1 = arith.constant 1 : index
    %c0_45 = arith.constant 0 : index
    %c0_46 = arith.constant 0 : index
    %114 = vector.load %arg6[%c1, %c0_45, %c0_46] : memref<2x8x32xf32, #tpu.memory_space<vmem>>, vector<1x8x8xf32>
    %115 = vector.shape_cast %114 : vector<1x8x8xf32> to vector<8x8xf32>
    %116 = vector.shape_cast %113 : vector<8x8xf32> to vector<1x8x8xf32>
    tpu.vector_store %arg6[%c1, %c0_45, %c0_46], %116 {strides = array<i32>} : memref<2x8x32xf32, #tpu.memory_space<vmem>>, vector<1x8x8xf32>,
    %117 = vector.extract_strided_slice %96 {offsets = [0, 8], sizes = [8, 8], strides = [1, 1]} : vector<8x96xf32> to vector<8x8xf32>
    %118 = vector.extract_strided_slice %96 {offsets = [0, 40], sizes = [8, 8], strides = [1, 1]} : vector<8x96xf32> to vector<8x8xf32>
    %119 = vector.extract_strided_slice %96 {offsets = [0, 72], sizes = [8, 8], strides = [1, 1]} : vector<8x96xf32> to vector<8x8xf32>
    %cst_47 = arith.constant dense<0.000000e+00> : vector<8x8xf32>
    %120 = tpu.matmul %117, %118, %cst_47 {dimension_numbers = #tpu.dot_dimension_numbers<[1], [1], [0], [0], [0, 0, 1, 0], [], []>} : vector<8x8xf32>, vector<8x8xf32>, vector<8x8xf32> -> vector<8x8xf32>
    %121 = vector.extract_strided_slice %14 {offsets = [1, 1, 0, 0], sizes = [1, 1, 8, 8], strides = [1, 1, 1, 1]} : vector<2x4x8x8xf32> to vector<1x1x8x8xf32>
    %122 = vector.shape_cast %121 : vector<1x1x8x8xf32> to vector<8x8xf32>
    %123 = arith.addf %120, %122 : vector<8x8xf32>
    %cst_48 = arith.constant dense<0xFF800000> : vector<8xf32>
    %124 = vector.multi_reduction <maximumf>, %123, %cst_48 [1] : vector<8x8xf32> to vector<8xf32>
    %125 = vector.shape_cast %124 : vector<8xf32> to vector<8x1xf32>
    %126 = vector.broadcast %125 : vector<8x1xf32> to vector<8x8xf32>
    %127 = arith.subf %123, %126 : vector<8x8xf32>
    %128 = math.exp %127 : vector<8x8xf32>
    %cst_49 = arith.constant dense<0.000000e+00> : vector<8xf32>
    %129 = vector.multi_reduction <add>, %128, %cst_49 [1] : vector<8x8xf32> to vector<8xf32>
    %130 = vector.shape_cast %129 : vector<8xf32> to vector<8x1xf32>
    %131 = vector.broadcast %130 : vector<8x1xf32> to vector<8x8xf32>
    %132 = arith.divf %128, %131 : vector<8x8xf32>
    %cst_50 = arith.constant dense<0.000000e+00> : vector<8x8xf32>
    %133 = tpu.matmul %132, %119, %cst_50 {dimension_numbers = #tpu.dot_dimension_numbers<[1], [0], [0], [1], [0, 0, 1, 1], [], []>} : vector<8x8xf32>, vector<8x8xf32>, vector<8x8xf32> -> vector<8x8xf32>
    %c1_51 = arith.constant 1 : index
    %c0_52 = arith.constant 0 : index
    %c8_53 = arith.constant 8 : index
    %134 = vector.load %arg6[%c1_51, %c0_52, %c8_53] : memref<2x8x32xf32, #tpu.memory_space<vmem>>, vector<1x8x8xf32>
    %135 = vector.shape_cast %134 : vector<1x8x8xf32> to vector<8x8xf32>
    %136 = vector.shape_cast %133 : vector<8x8xf32> to vector<1x8x8xf32>
    tpu.vector_store %arg6[%c1_51, %c0_52, %c8_53], %136 {strides = array<i32>} : memref<2x8x32xf32, #tpu.memory_space<vmem>>, vector<1x8x8xf32>,
    %137 = vector.extract_strided_slice %96 {offsets = [0, 16], sizes = [8, 8], strides = [1, 1]} : vector<8x96xf32> to vector<8x8xf32>
    %138 = vector.extract_strided_slice %96 {offsets = [0, 48], sizes = [8, 8], strides = [1, 1]} : vector<8x96xf32> to vector<8x8xf32>
    %139 = vector.extract_strided_slice %96 {offsets = [0, 80], sizes = [8, 8], strides = [1, 1]} : vector<8x96xf32> to vector<8x8xf32>
    %cst_54 = arith.constant dense<0.000000e+00> : vector<8x8xf32>
    %140 = tpu.matmul %137, %138, %cst_54 {dimension_numbers = #tpu.dot_dimension_numbers<[1], [1], [0], [0], [0, 0, 1, 0], [], []>} : vector<8x8xf32>, vector<8x8xf32>, vector<8x8xf32> -> vector<8x8xf32>
    %141 = vector.extract_strided_slice %14 {offsets = [1, 2, 0, 0], sizes = [1, 1, 8, 8], strides = [1, 1, 1, 1]} : vector<2x4x8x8xf32> to vector<1x1x8x8xf32>
    %142 = vector.shape_cast %141 : vector<1x1x8x8xf32> to vector<8x8xf32>
    %143 = arith.addf %140, %142 : vector<8x8xf32>
    %cst_55 = arith.constant dense<0xFF800000> : vector<8xf32>
    %144 = vector.multi_reduction <maximumf>, %143, %cst_55 [1] : vector<8x8xf32> to vector<8xf32>
    %145 = vector.shape_cast %144 : vector<8xf32> to vector<8x1xf32>
    %146 = vector.broadcast %145 : vector<8x1xf32> to vector<8x8xf32>
    %147 = arith.subf %143, %146 : vector<8x8xf32>
    %148 = math.exp %147 : vector<8x8xf32>
    %cst_56 = arith.constant dense<0.000000e+00> : vector<8xf32>
    %149 = vector.multi_reduction <add>, %148, %cst_56 [1] : vector<8x8xf32> to vector<8xf32>
    %150 = vector.shape_cast %149 : vector<8xf32> to vector<8x1xf32>
    %151 = vector.broadcast %150 : vector<8x1xf32> to vector<8x8xf32>
    %152 = arith.divf %148, %151 : vector<8x8xf32>
    %cst_57 = arith.constant dense<0.000000e+00> : vector<8x8xf32>
    %153 = tpu.matmul %152, %139, %cst_57 {dimension_numbers = #tpu.dot_dimension_numbers<[1], [0], [0], [1], [0, 0, 1, 1], [], []>} : vector<8x8xf32>, vector<8x8xf32>, vector<8x8xf32> -> vector<8x8xf32>
    %c1_58 = arith.constant 1 : index
    %c0_59 = arith.constant 0 : index
    %c16_60 = arith.constant 16 : index
    %154 = vector.load %arg6[%c1_58, %c0_59, %c16_60] : memref<2x8x32xf32, #tpu.memory_space<vmem>>, vector<1x8x8xf32>
    %155 = vector.shape_cast %154 : vector<1x8x8xf32> to vector<8x8xf32>
    %156 = vector.shape_cast %153 : vector<8x8xf32> to vector<1x8x8xf32>
    tpu.vector_store %arg6[%c1_58, %c0_59, %c16_60], %156 {strides = array<i32>} : memref<2x8x32xf32, #tpu.memory_space<vmem>>, vector<1x8x8xf32>,
    %157 = vector.extract_strided_slice %96 {offsets = [0, 24], sizes = [8, 8], strides = [1, 1]} : vector<8x96xf32> to vector<8x8xf32>
    %158 = vector.extract_strided_slice %96 {offsets = [0, 56], sizes = [8, 8], strides = [1, 1]} : vector<8x96xf32> to vector<8x8xf32>
    %159 = vector.extract_strided_slice %96 {offsets = [0, 88], sizes = [8, 8], strides = [1, 1]} : vector<8x96xf32> to vector<8x8xf32>
    %cst_61 = arith.constant dense<0.000000e+00> : vector<8x8xf32>
    %160 = tpu.matmul %157, %158, %cst_61 {dimension_numbers = #tpu.dot_dimension_numbers<[1], [1], [0], [0], [0, 0, 1, 0], [], []>} : vector<8x8xf32>, vector<8x8xf32>, vector<8x8xf32> -> vector<8x8xf32>
    %161 = vector.extract_strided_slice %14 {offsets = [1, 3, 0, 0], sizes = [1, 1, 8, 8], strides = [1, 1, 1, 1]} : vector<2x4x8x8xf32> to vector<1x1x8x8xf32>
    %162 = vector.shape_cast %161 : vector<1x1x8x8xf32> to vector<8x8xf32>
    %163 = arith.addf %160, %162 : vector<8x8xf32>
    %cst_62 = arith.constant dense<0xFF800000> : vector<8xf32>
    %164 = vector.multi_reduction <maximumf>, %163, %cst_62 [1] : vector<8x8xf32> to vector<8xf32>
    %165 = vector.shape_cast %164 : vector<8xf32> to vector<8x1xf32>
    %166 = vector.broadcast %165 : vector<8x1xf32> to vector<8x8xf32>
    %167 = arith.subf %163, %166 : vector<8x8xf32>
    %168 = math.exp %167 : vector<8x8xf32>
    %cst_63 = arith.constant dense<0.000000e+00> : vector<8xf32>
    %169 = vector.multi_reduction <add>, %168, %cst_63 [1] : vector<8x8xf32> to vector<8xf32>
    %170 = vector.shape_cast %169 : vector<8xf32> to vector<8x1xf32>
    %171 = vector.broadcast %170 : vector<8x1xf32> to vector<8x8xf32>
    %172 = arith.divf %168, %171 : vector<8x8xf32>
    %cst_64 = arith.constant dense<0.000000e+00> : vector<8x8xf32>
    %173 = tpu.matmul %172, %159, %cst_64 {dimension_numbers = #tpu.dot_dimension_numbers<[1], [0], [0], [1], [0, 0, 1, 1], [], []>} : vector<8x8xf32>, vector<8x8xf32>, vector<8x8xf32> -> vector<8x8xf32>
    %c1_65 = arith.constant 1 : index
    %c0_66 = arith.constant 0 : index
    %c24_67 = arith.constant 24 : index
    %174 = vector.load %arg6[%c1_65, %c0_66, %c24_67] : memref<2x8x32xf32, #tpu.memory_space<vmem>>, vector<1x8x8xf32>
    %175 = vector.shape_cast %174 : vector<1x8x8xf32> to vector<8x8xf32>
    %176 = vector.shape_cast %173 : vector<8x8xf32> to vector<1x8x8xf32>
    tpu.vector_store %arg6[%c1_65, %c0_66, %c24_67], %176 {strides = array<i32>} : memref<2x8x32xf32, #tpu.memory_space<vmem>>, vector<1x8x8xf32>,
    return
  }
}

</mosaic_0001>

<bundles_post_ra>
// kernel: layoutlmv3_self_attention.1
= control target key start
LH: loop header
LB: loop body
LE: loop exit
PB: predicated region body
PF: predicated region fallthrough
CT: control target
= control target key end

     0   :  { %11 = vsyncpa [#allocation3], 0  ;;  %s2197_s0 = inlined_call_operand.hbm [shape: f32[16,32], index: 0, kind: input, shape index: {}]   ;;  %s2198_s1 = inlined_call_operand.hbm [shape: f32[32,96], index: 1, kind: input, shape index: {}]   ;;  %s2199_s2 = inlined_call_operand.vmem [shape: f32[1,96], index: 2, kind: input, shape index: {}]   ;;  %s2200_s3 = inlined_call_operand.hbm [shape: f32[2,4,8,8], index: 3, kind: input, shape index: {}]   ;;  %s2201_s4 = inlined_call_operand.hbm [shape: f32[2,4,8,8], index: 4, kind: input, shape index: {}]   ;;  %s2202_s5 = inlined_call_operand.vmem [shape: f32[2,8], index: 5, kind: input, shape index: {}]   ;;  %s2203_s6 = inlined_call_operand.hbm [shape: f32[2,8,32], index: 6, kind: output, shape index: {}]  }
   0x1   :  { %12 = vsyncpa [#allocation6], 0 }
   0x2   :  { %13 = vsyncpa [#allocation9], 0 }
   0x3   :  { %14 = vsyncpa [#allocation4], 0  ;;  %s1942_s21 = smov [#allocation5]   ;;  %s1943_s23 = smov [#allocation2]  }
   0x4   :  { %s32_s22 = sshll.u32 %s1942_s21, 4  ;;  %s20_s24 = sshll.u32 %s1943_s23, 4  ;;  %s33_s22 = int_to_ptr.vmem [resolvable:$true] %s32_s22  ;;  %s21_s24 = int_to_ptr.vmem [resolvable:$true] %s20_s24 }
   0x5   :  { %s1842_s25 = scalar_lea.vmem %s33_s22, 512  ;;  %p1847_p1 = scmp.lt.s32.totalorder %s33_s22, %s33_s22 }
   0x6   :  { %p1843_p0 = scmp.ne.s32.totalorder %s33_s22, %s1842_s25  ;;  %p1848_p2 = scmp.lt.s32.totalorder %s1842_s25, %s1842_s25 }
   0x8   :  { %p1849_p3 = por %p1848_p2, %p1847_p1 }
   0xa   :  { %p1850_p4 = pnand %p1849_p3, %p1843_p0 }
   0xc   :  { %1853 = shalt.err (!%p1850_p4)
}
   0xd   :  { %s1944_s26 = smov 128   ;;  %s1945_s27 = smov 8  }
   0xe   :  { %38 = dma.hbm_to_vmem [thread:$0]  %s2198_s1, 512, %s33_s22, [#allocation6], %s1944_s26, %s1944_s26, %s1945_s27  }
   0xf   :  { %s1862_s30 = scalar_lea.vmem %s21_s24, 256  ;;  %p1867_p6 = scmp.lt.s32.totalorder %s21_s24, %s21_s24 }
  0x10   :  { %p1863_p5 = scmp.ne.s32.totalorder %s21_s24, %s1862_s30  ;;  %p1868_p7 = scmp.lt.s32.totalorder %s1862_s30, %s1862_s30 }
  0x12   :  { %p1869_p8 = por %p1868_p7, %p1867_p6 }
  0x14   :  { %p1870_p9 = pnand %p1869_p8, %p1863_p5 }
  0x16   :  { %1873 = shalt.err (!%p1870_p9)
}
  0x17   :  { %26 = dma.hbm_to_vmem [thread:$0]  %s2197_s0, 256, %s21_s24, [#allocation3], %s1944_s26, %s1944_s26, %s1945_s27  }
  0x18   :  { %s1946_s9 = smov [#allocation7]   ;;  %s1947_s11 = smov [#allocation8]  }
  0x19   :  { %s46_s10 = sshll.u32 %s1946_s9, 4  ;;  %s58_s12 = sshll.u32 %s1947_s11, 4  ;;  %s47_s10 = int_to_ptr.vmem [resolvable:$true] %s46_s10  ;;  %s59_s12 = int_to_ptr.vmem [resolvable:$true] %s58_s12 }
  0x1a   :  { %s1882_s1 = scalar_lea.vmem %s47_s10, 1024  ;;  %p1887_p11 = scmp.lt.s32.totalorder %s47_s10, %s47_s10 }
  0x1b   :  { %p1883_p10 = scmp.ne.s32.totalorder %s47_s10, %s1882_s1  ;;  %p1888_p12 = scmp.lt.s32.totalorder %s1882_s1, %s1882_s1 }
  0x1d   :  { %p1889_p13 = por %p1888_p12, %p1887_p11 }
  0x1f   :  { %p1890_p0 = pnand %p1889_p13, %p1883_p10 }
  0x21   :  { %1893 = shalt.err (!%p1890_p0)
}
  0x22   :  { %52 = dma.hbm_to_vmem [thread:$0]  %s2200_s3, 1024, %s47_s10, [#allocation6], %s1944_s26, %s1944_s26, %s1945_s27  }
  0x23   :  { %s1902_s0 = scalar_lea.vmem %s59_s12, 1024  ;;  %p1907_p2 = scmp.lt.s32.totalorder %s59_s12, %s59_s12 }
  0x24   :  { %p1903_p1 = scmp.ne.s32.totalorder %s59_s12, %s1902_s0  ;;  %p1908_p3 = scmp.lt.s32.totalorder %s1902_s0, %s1902_s0 }
  0x26   :  { %p1909_p4 = por %p1908_p3, %p1907_p2 }
  0x28   :  { %p1910_p5 = pnand %p1909_p4, %p1903_p1 }
  0x2a   :  { %1913 = shalt.err (!%p1910_p5)
}
  0x2b   :  { %64 = dma.hbm_to_vmem [thread:$0]  %s2201_s4, 1024, %s59_s12, [#allocation9], %s1944_s26, %s1944_s26, %s1945_s27  }
  0x2c   :  { %1934 = dma.done.wait [#allocation3], 256  }
  0x2d   :  { %1935 = vsyncadd [#allocation3], 4294967040 }
  0x2e   :  { %1936 = dma.done.wait [#allocation6], 1536  }
  0x2f   :  { %1937 = vsyncadd [#allocation6], 4294965760 }
  0x30   :  { %1938 = dma.done.wait [#allocation9], 1024  }
  0x31   :  { %1939 = vsyncadd [#allocation9], 4294966272  ;;  %vm92_vm0 = vcmask 261120   ;;  %v84_v0 = vld [vmem:[#allocation5 + $0x18] sm:$0xff]  ;;  %v83_v1 = vld [vmem:[#allocation5 + $0x10] sm:$0xff]  ;;  %v1948_v6 = vmov 0.0   ;;  %v219_v29 = vlaneseq }
  0x32   :  { %1688 = vmatprep.subr.mxu0 %v84_v0  ;;  %v79_v2 = vld [vmem:[#allocation2] sm:$0xff]  ;;  %v82_v3 = vld [vmem:[#allocation5 + $0x8] sm:$0xff]  ;;  %v81_v4 = vld [vmem:[#allocation5] sm:$0xff]  ;;  %1699 = vmatprep.subr.mxu1 %v1948_v6  ;;  %vm1949_vm1 = vmmov 0   ;;  %s1950_s17 = smov 120   ;;  %s1951_s18 = smov 96  }
  0x33   :  { %1689 = vmatpush3.msra.mxu0 %v84_v0  ;;  %1696 = vmatprep.mubr.msk.f32.mxu0 %vm92_vm0, %v79_v2  ;;  %v80_v5 = vld [vmem:[#allocation2 + $0x8] sm:$0xff]  ;;  %v1622_v8 = vld [vmem:[%s2199_s2] ss:$0 sm:$0xff]  ;;  %s1952_s19 = smov 80   ;;  %s1953_s20 = smov 88   ;;  %vm251_vm2 = vcmask 64512  }
  0x34   :  { %1690 = vmatprep.subr.mxu0 %v83_v1  ;;  %1701 = vmatprep.mubr.msk.f32.mxu1 %vm1949_vm1, %v1948_v6  ;;  %s1954_s21 = smov 72   ;;  %s1955_s22 = smov 112   ;;  %v1959_v27 = vmov 1966171168   ;;  %v220_v31 = vshrl.u32 %v219_v29, 7  ;;  %v174_v33 = vld [vmem:[#allocation7] sm:$0xff] }
  0x35   :  { %1691 = vmatpush3.msra.mxu0 %v83_v1  ;;  %s1956_s2 = smov 104   ;;  %s1957_s23 = smov 56   ;;  %v217_v28 = vunpack.c.l.s4 %v1959_v27  ;;  %v182_v34 = vld [vmem:[#allocation8] sm:$0xff]  ;;  %v175_v39 = vld [vmem:[#allocation7 + $0x8] sm:$0xff]  ;;  %v176_v44 = vld [vmem:[#allocation7 + $0x10] sm:$0xff]  ;;  %vm583_vm3 = vcmask 130112  }
  0x36   :  { %1692 = vmatprep.subr.mxu0 %v82_v3  ;;  %s1958_s24 = smov 64   ;;  %v1625_v35 = vld.sshfl [vmem:[%s2202_s5] sm:$0x11 pattern:$0x75316420]  ;;  %v190_v36 = vadd.f32 %v182_v34, %v174_v33  ;;  %v232_v38 = vsub.s32 0, %v220_v31 }
  0x37   :  { %1693 = vmatpush3.msra.mxu0 %v82_v3  ;;  %v218_v30 = vunpack.c.0.s8 %v217_v28  ;;  %v183_v40 = vld [vmem:[#allocation8 + $0x8] sm:$0xff]  ;;  %v184_v45 = vld [vmem:[#allocation8 + $0x10] sm:$0xff]  ;;  %v177_v49 = vld [vmem:[#allocation7 + $0x18] sm:$0xff]  ;;  %v215_v56 = vcombine.high %v1625_v35, %v1625_v35  ;;  %s1960_s5 = smov 40   ;;  %s1961_s29 = smov 48   ;;  %vm754_vm4 = vcmask 195712  }
  0x38   :  { %1694 = vmatprep.subr.mxu0 %v81_v4  ;;  %v198_v41 = vmul.f32 0.35355338, %v190_v36  ;;  %v191_v43 = vadd.f32 %v183_v40, %v175_v39  ;;  %v192_v48 = vadd.f32 %v184_v45, %v176_v44  ;;  %v185_v50 = vld [vmem:[#allocation8 + $0x18] sm:$0xff]  ;;  %v178_v58 = vld [vmem:[#allocation7 + $0x20] sm:$0xff]  ;;  %s1962_s30 = smov 16   ;;  %s1963_s7 = smov 24  }
  0x39   :  { %1695 = vmatpush3.msra.mxu0 %v81_v4  ;;  %v221_v32 = vsub.s32 %v218_v30, %v220_v31  ;;  %v193_v52 = vadd.f32 %v185_v50, %v177_v49  ;;  %v186_v59 = vld [vmem:[#allocation8 + $0x20] sm:$0xff]  ;;  %v179_v4 = vld [vmem:[#allocation7 + $0x28] sm:$0xff]  ;;  %v189_v27 = vld [vmem:[#allocation8 + $0x38] sm:$0xff]  ;;  %vm925_vm5 = vcmask 261312   ;;  %s1964_s8 = smov [#allocation10]  }
  0x3a   :  { %1697 = vmatmul.mubr.msk.f32.vlgmr.msra.gmra.mxu0 %vm92_vm0, %v80_v5  ;;  %1709 = vmatprep.subr.mxu0 %v1948_v6  ;;  %v199_v47 = vmul.f32 0.35355338, %v191_v43  ;;  %v200_v55 = vmul.f32 0.35355338, %v192_v48  ;;  %v194_v1 = vadd.f32 %v186_v59, %v178_v58  ;;  %v187_v5 = vld [vmem:[#allocation8 + $0x28] sm:$0xff]  ;;  %s1608_s9 = sshll.u32 %s1964_s8, 4  ;;  %s1609_s9 = int_to_ptr.vmem [resolvable:$true] %s1608_s9 }
  0x3b   :  { %1711 = vmatprep.mubr.msk.f32.mxu0 %vm1949_vm1, %v1948_v6  ;;  %v222_v37 = vrot.slane %v1625_v35, %v221_v32  ;;  %v201_v62 = vmul.f32 0.35355338, %v193_v52  ;;  %v229_v2 = vrot.slane %v215_v56, %v221_v32  ;;  %s1914_s10 = scalar_lea.vmem %s1609_s9, 256  ;;  %p1919_p7 = scmp.lt.s32.totalorder %s1609_s9, %s1609_s9 }
  0x3c   :  { %p1915_p6 = scmp.ne.s32.totalorder %s1609_s9, %s1914_s10  ;;  %p1920_p8 = scmp.lt.s32.totalorder %s1914_s10, %s1914_s10 }
  0x3d   :  { %v233_v42 = vrot.slane %v222_v37, %v232_v38 }
  0x3e   :  { %p1921_p9 = por %p1920_p8, %p1919_p7 }
  0x3f   :  { %v240_v46 = vadd.f32 %v233_v42, %v198_v41  ;;  %v241_v54 = vadd.f32 %v233_v42, %v199_v47  ;;  %v242_v0 = vadd.f32 %v233_v42, %v200_v55 }
  0x40   :  { %p1922_p10 = pnand %p1921_p9, %p1915_p6 }
  0xfa   :  { %v1698_v7 = vpop.f32.mrf.mxu0 }
  0xfb   :  { %v2043_v11 = vadd.f32 %v1698_v7, %v1622_v8 }
  0xfc   :  { %v165_v9 = vpop.f32.mrf.mxu0 }
  0xfd   :  { %v2035_v10 = vadd.f32 %v1622_v8, %v165_v9  ;;  %v243_v9 = vadd.f32 %v233_v42, %v201_v62 }
  0xff   :  { %414 = vrot.lane.b32.xlu1 %v2035_v10, %s1950_s17  ;;  %249 = vrot.lane.b32.xlu0 %v2035_v10, %s1951_s18 }
 0x103   :  { %587 = vrot.lane.b32.xlu1 %v2035_v10, %s1952_s19  ;;  %416 = vrot.lane.b32.xlu0 %v2035_v10, %s1953_s20 }
 0x107   :  { %758 = vrot.lane.b32.xlu1 %v2035_v10, %s1954_s21  ;;  %585 = vrot.lane.b32.xlu0 %v2035_v10, %s1955_s22 }
 0x10b   :  { %928 = vrot.lane.b32.xlu1 %v2043_v11, %s1951_s18  ;;  %756 = vrot.lane.b32.xlu0 %v2035_v10, %s1956_s2 }
 0x10f   :  { %1093 = vrot.lane.b32.xlu1 %v2043_v11, %s1950_s17  ;;  %1095 = vrot.lane.b32.xlu0 %v2043_v11, %s1953_s20 }
 0x113   :  { %1263 = vrot.lane.b32.xlu1 %v2043_v11, %s1955_s22  ;;  %1265 = vrot.lane.b32.xlu0 %v2043_v11, %s1952_s19 }
 0x117   :  { %1433 = vrot.lane.b32.xlu1 %v2043_v11, %s1956_s2  ;;  %1435 = vrot.lane.b32.xlu0 %v2043_v11, %s1954_s21 }
 0x11b   :  { %503 = vrot.lane.b32.xlu1 %v2035_v10, %s1957_s23  ;;  %337 = vrot.lane.b32.xlu0 %v2035_v10, %s1958_s24 }
 0x171   :  { %v415_v12 = vpop.permute.xlu1 %414  ;;  %v250_v13 = vpop.permute.xlu0 %249 }
 0x172   :  { %1700 = vmatpush3.xpose.msk.msra.mxu1 %vm251_vm2, %v250_v13  ;;  %v202_v13 = vmul.f32 0.35355338, %v194_v1 }
 0x173   :  { %1704 = vmatprep.subr.mxu1 %v1948_v6 }
 0x175   :  { %v588_v14 = vpop.permute.xlu1 %587  ;;  %1702 = vmatmul.mubr.msk.f32.vlgmr.msra.gmra.mxu1 %vm251_vm2, %v2035_v10  ;;  %v417_v15 = vpop.permute.xlu0 %416 }
 0x176   :  { %1710 = vmatpush3.xpose.msk.msra.mxu0 %vm251_vm2, %v417_v15  ;;  %1706 = vmatprep.mubr.msk.f32.mxu1 %vm1949_vm1, %v1948_v6  ;;  %v195_v15 = vadd.f32 %v187_v5, %v179_v4 }
 0x177   :  { %1719 = vmatprep.subr.mxu0 %v1948_v6 }
 0x179   :  { %v759_v16 = vpop.permute.xlu1 %758  ;;  %1712 = vmatmul.mubr.msk.f32.vlgmr.msra.gmra.mxu0 %vm251_vm2, %v415_v12  ;;  %v586_v17 = vpop.permute.xlu0 %585 }
 0x17a   :  { %1720 = vmatpush3.xpose.msk.msra.mxu0 %vm251_vm2, %v588_v14  ;;  %1721 = vmatprep.mubr.msk.f32.mxu0 %vm1949_vm1, %v1948_v6  ;;  %v237_v14 = vrot.slane %v229_v2, %v232_v38 }
 0x17b   :  { %1729 = vmatprep.subr.mxu0 %v1948_v6 }
 0x17d   :  { %1722 = vmatmul.mubr.msk.f32.vlgmr.msra.gmra.mxu0 %vm251_vm2, %v586_v17  ;;  %v757_v18 = vpop.permute.xlu0 %756  ;;  %v929_v19 = vpop.permute.xlu1 %928  ;;  %v180_v17 = vld [vmem:[#allocation7 + $0x30] sm:$0xff] }
 0x17e   :  { %1730 = vmatpush3.xpose.msk.msra.mxu0 %vm251_vm2, %v759_v16  ;;  %1731 = vmatprep.mubr.msk.f32.mxu0 %vm1949_vm1, %v1948_v6 }
 0x17f   :  { %1739 = vmatprep.subr.mxu0 %v1948_v6 }
 0x181   :  { %1732 = vmatmul.mubr.msk.f32.vlgmr.msra.gmra.mxu0 %vm251_vm2, %v757_v18  ;;  %v1096_v20 = vpop.permute.xlu0 %1095  ;;  %v1094_v21 = vpop.permute.xlu1 %1093  ;;  %v188_v18 = vld [vmem:[#allocation8 + $0x30] sm:$0xff] }
 0x182   :  { %1740 = vmatpush3.xpose.msk.msra.mxu0 %vm251_vm2, %v929_v19  ;;  %1741 = vmatprep.mubr.msk.f32.mxu0 %vm1949_vm1, %v1948_v6 }
 0x183   :  { %1749 = vmatprep.subr.mxu0 %v1948_v6 }
 0x185   :  { %1742 = vmatmul.mubr.msk.f32.vlgmr.msra.gmra.mxu0 %vm251_vm2, %v2043_v11  ;;  %v1266_v22 = vpop.permute.xlu0 %1265  ;;  %v1264_v24 = vpop.permute.xlu1 %1263 }
 0x186   :  { %1750 = vmatpush3.xpose.msk.msra.mxu0 %vm251_vm2, %v1096_v20  ;;  %1751 = vmatprep.mubr.msk.f32.mxu0 %vm1949_vm1, %v1948_v6 }
 0x187   :  { %1759 = vmatprep.subr.mxu0 %v1948_v6 }
 0x189   :  { %1752 = vmatmul.mubr.msk.f32.vlgmr.msra.gmra.mxu0 %vm251_vm2, %v1094_v21  ;;  %v1436_v23 = vpop.permute.xlu0 %1435  ;;  %v1434_v26 = vpop.permute.xlu1 %1433 }
 0x18a   :  { %1760 = vmatpush3.xpose.msk.msra.mxu0 %vm251_vm2, %v1266_v22  ;;  %1761 = vmatprep.mubr.msk.f32.mxu0 %vm1949_vm1, %v1948_v6  ;;  %v244_v22 = vadd.f32 %v237_v14, %v202_v13 }
 0x18b   :  { %1769 = vmatprep.subr.mxu0 %v1948_v6 }
 0x18d   :  { %1762 = vmatmul.mubr.msk.f32.vlgmr.msra.gmra.mxu0 %vm251_vm2, %v1264_v24  ;;  %v338_v25 = vpop.permute.xlu0 %337  ;;  %v196_v24 = vadd.f32 %v188_v18, %v180_v17 }
 0x18e   :  { %1705 = vmatpush3.msra.mxu1 %v338_v25  ;;  %1770 = vmatpush3.xpose.msk.msra.mxu0 %vm251_vm2, %v1436_v23  ;;  %v203_v23 = vmul.f32 0.35355338, %v195_v15 }
 0x18f   :  { %1771 = vmatprep.mubr.msk.f32.mxu0 %vm1949_vm1, %v1948_v6  ;;  %1714 = vmatprep.subr.mxu1 %v1948_v6  ;;  %v204_v32 = vmul.f32 0.35355338, %v196_v24 }
 0x190   :  { %v245_v31 = vadd.f32 %v237_v14, %v203_v23 }
 0x191   :  { %1772 = vmatmul.mubr.msk.f32.vlgmr.msra.gmra.mxu0 %vm251_vm2, %v1434_v26  ;;  %v181_v26 = vld [vmem:[#allocation7 + $0x38] sm:$0xff]  ;;  %v246_v38 = vadd.f32 %v237_v14, %v204_v32 }
 0x192   :  { %v197_v33 = vadd.f32 %v189_v27, %v181_v26 }
 0x194   :  { %v205_v39 = vmul.f32 0.35355338, %v197_v33 }
 0x196   :  { %v247_v44 = vadd.f32 %v237_v14, %v205_v39 }
 0x235   :  { %v322_v51 = vpop.f32.mrf.mxu1 }
 0x236   :  { %v2100_v53 = vadd.f32 %v322_v51, %v240_v46  ;;  %v2121_v51 = vpop.permute.xlu1 %503 }
 0x237   :  { %v1703_v57 = vpop.f32.mrf.mxu1 }
 0x238   :  { %v326_v60 = vsel %vm251_vm2, %v2100_v53, -inf }
 0x239   :  { %327 = vmax.xlane.f32.xlu0 %v326_v60  ;;  %v488_v61 = vpop.f32.mrf.mxu0 }
 0x23a   :  { %v2104_v63 = vadd.f32 %v488_v61, %v241_v54 }
 0x23b   :  { %v1713_v3 = vpop.f32.mrf.mxu0 }
 0x23c   :  { %v492_v7 = vsel %vm251_vm2, %v2104_v63, -inf }
 0x23d   :  { %493 = vmax.xlane.f32.xlu1 %v492_v7  ;;  %v659_v8 = vpop.f32.mrf.mxu0 }
 0x23e   :  { %v660_v12 = vadd.f32 %v659_v8, %v242_v0 }
 0x23f   :  { %v1723_v16 = vpop.f32.mrf.mxu0 }
 0x240   :  { %v663_v19 = vsel %vm251_vm2, %v660_v12, -inf }
 0x241   :  { %664 = vmax.xlane.f32.xlu0 %v663_v19  ;;  %v830_v20 = vpop.f32.mrf.mxu0 }
 0x242   :  { %v831_v21 = vadd.f32 %v830_v20, %v243_v9 }
 0x243   :  { %v1733_v25 = vpop.f32.mrf.mxu0 }
 0x244   :  { %v834_v28 = vsel %vm251_vm2, %v831_v21, -inf }
 0x245   :  { %835 = vmax.xlane.f32.xlu0 %v834_v28  ;;  %v1000_v29 = vpop.f32.mrf.mxu0 }
 0x246   :  { %v2110_v30 = vadd.f32 %v1000_v29, %v244_v22 }
 0x247   :  { %v1743_v34 = vpop.f32.mrf.mxu0 }
 0x248   :  { %v1004_v35 = vsel %vm251_vm2, %v2110_v30, -inf }
 0x249   :  { %1005 = vmax.xlane.f32.xlu1 %v1004_v35  ;;  %v1167_v36 = vpop.f32.mrf.mxu0 }
 0x24a   :  { %v1168_v37 = vadd.f32 %v1167_v36, %v245_v31 }
 0x24b   :  { %v1753_v40 = vpop.f32.mrf.mxu0 }
 0x24c   :  { %v1171_v41 = vsel %vm251_vm2, %v1168_v37, -inf }
 0x24d   :  { %1172 = vmax.xlane.f32.xlu0 %v1171_v41  ;;  %v1337_v42 = vpop.f32.mrf.mxu0 }
 0x24e   :  { %v1338_v43 = vadd.f32 %v1337_v42, %v246_v38 }
 0x24f   :  { %v1763_v45 = vpop.f32.mrf.mxu0 }
 0x250   :  { %v1341_v46 = vsel %vm251_vm2, %v1338_v43, -inf }
 0x251   :  { %1342 = vmax.xlane.f32.xlu1 %v1341_v46  ;;  %v1507_v47 = vpop.f32.mrf.mxu0 }
 0x252   :  { %v1508_v48 = vadd.f32 %v1507_v47, %v247_v44 }
 0x253   :  { %v1773_v49 = vpop.f32.mrf.mxu0 }
 0x254   :  { %v1511_v50 = vsel %vm251_vm2, %v1508_v48, -inf }
 0x255   :  { %1512 = vmax.xlane.f32.xlu0 %v1511_v50 }
 0x262   :  { %845 = vrot.lane.b32.xlu1 %v2035_v10, %s1960_s5 }
 0x26b   :  { %674 = vrot.lane.b32.xlu0 %v2035_v10, %s1961_s29 }
 0x2c2   :  { %v328_v52 = vpop.xlane.xlu0 %327 }
 0x2c3   :  { %v329_v54 = vsub.f32 %v2100_v53, %v328_v52 }
 0x2c5   :  { %v330_v55 = vmul.f32 1.442695, %v329_v54 }
 0x2c6   :  { %v494_v56 = vpop.xlane.xlu1 %493 }
 0x2c7   :  { %1802 = vpow2.f32 %v330_v55  ;;  %v495_v57 = vsub.f32 %v2104_v63, %v494_v56 }
 0x2c9   :  { %v496_v58 = vmul.f32 1.442695, %v495_v57 }
 0x2ca   :  { %v665_v59 = vpop.xlane.xlu0 %664 }
 0x2cb   :  { %1804 = vpow2.f32 %v496_v58  ;;  %v666_v60 = vsub.f32 %v660_v12, %v665_v59 }
 0x2cd   :  { %v667_v61 = vmul.f32 1.442695, %v666_v60 }
 0x2ce   :  { %v836_v62 = vpop.xlane.xlu0 %835 }
 0x2cf   :  { %1806 = vpow2.f32 %v667_v61  ;;  %v837_v0 = vsub.f32 %v831_v21, %v836_v62 }
 0x2d1   :  { %v838_v1 = vmul.f32 1.442695, %v837_v0 }
 0x2d2   :  { %v1006_v8 = vpop.xlane.xlu1 %1005 }
 0x2d3   :  { %1808 = vpow2.f32 %v838_v1  ;;  %v1007_v9 = vsub.f32 %v2110_v30, %v1006_v8 }
 0x2d4   :  { %v1803_v10 = vpop.eup %1802 }
 0x2d5   :  { %v332_v2 = vsel %vm251_vm2, %v1803_v10, 0.0  ;;  %v1008_v15 = vmul.f32 1.442695, %v1007_v9 }
 0x2d6   :  { %333 = vadd.xlane.f32.xlu1 %v332_v2  ;;  %v1173_v12 = vpop.xlane.xlu0 %1172 }
 0x2d7   :  { %v1174_v14 = vsub.f32 %v1168_v37, %v1173_v12  ;;  %1810 = vpow2.f32 %v1008_v15 }
 0x2d8   :  { %v1805_v53 = vpop.eup %1804 }
 0x2d9   :  { %v498_v3 = vsel %vm251_vm2, %v1805_v53, 0.0  ;;  %v1175_v18 = vmul.f32 1.442695, %v1174_v14 }
 0x2da   :  { %499 = vadd.xlane.f32.xlu0 %v498_v3  ;;  %v1343_v13 = vpop.xlane.xlu1 %1342 }
 0x2db   :  { %v1344_v16 = vsub.f32 %v1338_v43, %v1343_v13  ;;  %1812 = vpow2.f32 %v1175_v18 }
 0x2dc   :  { %v1807_v4 = vpop.eup %1806 }
 0x2dd   :  { %v669_v63 = vsel %vm251_vm2, %v1807_v4, 0.0  ;;  %v1345_v19 = vmul.f32 1.442695, %v1344_v16 }
 0x2de   :  { %670 = vadd.xlane.f32.xlu1 %v669_v63  ;;  %v1513_v17 = vpop.xlane.xlu0 %1512  ;;  %v846_v30 = vpop.permute.xlu1 %845 }
 0x2df   :  { %v1514_v20 = vsub.f32 %v1508_v48, %v1513_v17  ;;  %1814 = vpow2.f32 %v1345_v19 }
 0x2e0   :  { %v2128_v5 = vpop.eup %1808 }
 0x2e1   :  { %v840_v7 = vsel %vm251_vm2, %v2128_v5, 0.0  ;;  %v1515_v21 = vmul.f32 1.442695, %v1514_v20 }
 0x2e2   :  { %841 = vadd.xlane.f32.xlu0 %v840_v7  ;;  %v675_v31 = vpop.permute.xlu0 %674 }
 0x2e3   :  { %1816 = vpow2.f32 %v1515_v21 }
 0x2e4   :  { %v1811_v22 = vpop.eup %1810 }
 0x2e5   :  { %v1010_v24 = vsel %vm251_vm2, %v1811_v22, 0.0 }
 0x2e8   :  { %v2137_v23 = vpop.eup %1812 }
 0x2e9   :  { %v1177_v27 = vsel %vm251_vm2, %v2137_v23, 0.0 }
 0x2ec   :  { %v2140_v25 = vpop.eup %1814 }
 0x2ed   :  { %v1347_v26 = vsel %vm251_vm2, %v2140_v25, 0.0 }
 0x2ef   :  { %1182 = vrot.lane.b32.xlu1 %v2043_v11, %s1957_s23 }
 0x2f0   :  { %v2146_v28 = vpop.eup %1816 }
 0x2f1   :  { %v1517_v29 = vsel %vm251_vm2, %v2146_v28, 0.0 }
 0x2f8   :  { %1015 = vrot.lane.b32.xlu0 %v2043_v11, %s1958_s24 }
 0x313   :  { %1011 = vadd.xlane.f32.xlu1 %v1010_v24 }
 0x317   :  { %1348 = vadd.xlane.f32.xlu1 %v1347_v26  ;;  %1178 = vadd.xlane.f32.xlu0 %v1177_v27 }
 0x31b   :  { %1518 = vadd.xlane.f32.xlu1 %v1517_v29 }
 0x32c   :  { %1522 = vrot.lane.b32.xlu1 %v2043_v11, %s1960_s5 }
 0x32d   :  { %1352 = vrot.lane.b32.xlu0 %v2043_v11, %s1961_s29 }
 0x35f   :  { %v334_v32 = vpop.xlane.xlu1 %333 }
 0x360   :  { %1818 = vrcp.f32 %v334_v32 }
 0x363   :  { %v500_v33 = vpop.xlane.xlu0 %499 }
 0x364   :  { %1820 = vrcp.f32 %v500_v33 }
 0x367   :  { %v671_v34 = vpop.xlane.xlu1 %670 }
 0x368   :  { %1822 = vrcp.f32 %v671_v34 }
 0x36b   :  { %v842_v35 = vpop.xlane.xlu0 %841  ;;  %v1183_v44 = vpop.permute.xlu1 %1182 }
 0x36c   :  { %1824 = vrcp.f32 %v842_v35 }
 0x36d   :  { %v1819_v36 = vpop.eup %1818 }
 0x36e   :  { %v336_v37 = vmul.f32 %v1819_v36, %v1803_v10 }
 0x36f   :  { %v1016_v43 = vpop.permute.xlu0 %1015 }
 0x370   :  { %1707 = vmatmul.mubr.msk.f32.vlgmr.msra.gmra.mxu1 %vm251_vm2, %v336_v37 }
 0x371   :  { %v1821_v38 = vpop.eup %1820  ;;  %1715 = vmatpush3.msra.mxu1 %v2121_v51  ;;  %1716 = vmatprep.mubr.msk.f32.mxu1 %vm1949_vm1, %v1948_v6 }
 0x372   :  { %1724 = vmatprep.subr.mxu1 %v1948_v6  ;;  %v502_v11 = vmul.f32 %v1821_v38, %v1805_v53 }
 0x374   :  { %1717 = vmatmul.mubr.msk.f32.vlgmr.msra.gmra.mxu1 %vm251_vm2, %v502_v11 }
 0x375   :  { %v1823_v39 = vpop.eup %1822  ;;  %1725 = vmatpush3.msra.mxu1 %v675_v31  ;;  %1726 = vmatprep.mubr.msk.f32.mxu1 %vm1949_vm1, %v1948_v6 }
 0x376   :  { %1734 = vmatprep.subr.mxu1 %v1948_v6  ;;  %v673_v40 = vmul.f32 %v1823_v39, %v1807_v4 }
 0x378   :  { %1727 = vmatmul.mubr.msk.f32.vlgmr.msra.gmra.mxu1 %vm251_vm2, %v673_v40 }
 0x379   :  { %v1825_v41 = vpop.eup %1824  ;;  %1735 = vmatpush3.msra.mxu1 %v846_v30  ;;  %1736 = vmatprep.mubr.msk.f32.mxu1 %vm1949_vm1, %v1948_v6 }
 0x37a   :  { %1744 = vmatprep.subr.mxu1 %v1948_v6  ;;  %v844_v42 = vmul.f32 %v1825_v41, %v2128_v5 }
 0x37c   :  { %1737 = vmatmul.mubr.msk.f32.vlgmr.msra.gmra.mxu1 %vm251_vm2, %v844_v42 }
 0x37d   :  { %1745 = vmatpush3.msra.mxu1 %v1016_v43  ;;  %1746 = vmatprep.mubr.msk.f32.mxu1 %vm1949_vm1, %v1948_v6 }
 0x37e   :  { %1754 = vmatprep.subr.mxu1 %v1948_v6 }
 0x39c   :  { %v1012_v45 = vpop.xlane.xlu1 %1011 }
 0x39d   :  { %1826 = vrcp.f32 %v1012_v45 }
 0x3a0   :  { %v1349_v46 = vpop.xlane.xlu1 %1348  ;;  %v1179_v47 = vpop.xlane.xlu0 %1178 }
 0x3a1   :  { %1828 = vrcp.f32 %v1179_v47 }
 0x3a2   :  { %1830 = vrcp.f32 %v1349_v46 }
 0x3a4   :  { %v1519_v48 = vpop.xlane.xlu1 %1518  ;;  %v1353_v55 = vpop.permute.xlu0 %1352 }
 0x3a5   :  { %1832 = vrcp.f32 %v1519_v48 }
 0x3a8   :  { %v1523_v58 = vpop.permute.xlu1 %1522 }
 0x3aa   :  { %v1827_v49 = vpop.eup %1826 }
 0x3ab   :  { %v1014_v50 = vmul.f32 %v1827_v49, %v1811_v22 }
 0x3ad   :  { %1747 = vmatmul.mubr.msk.f32.vlgmr.msra.gmra.mxu1 %vm251_vm2, %v1014_v50 }
 0x3ae   :  { %1755 = vmatpush3.msra.mxu1 %v1183_v44  ;;  %1756 = vmatprep.mubr.msk.f32.mxu1 %vm1949_vm1, %v1948_v6  ;;  %v1829_v51 = vpop.eup %1828 }
 0x3af   :  { %1764 = vmatprep.subr.mxu1 %v1948_v6  ;;  %v1181_v52 = vmul.f32 %v1829_v51, %v2137_v23  ;;  %v1831_v54 = vpop.eup %1830 }
 0x3b0   :  { %v1351_v56 = vmul.f32 %v1831_v54, %v2140_v25 }
 0x3b1   :  { %1757 = vmatmul.mubr.msk.f32.vlgmr.msra.gmra.mxu1 %vm251_vm2, %v1181_v52 }
 0x3b2   :  { %1765 = vmatpush3.msra.mxu1 %v1353_v55  ;;  %1766 = vmatprep.mubr.msk.f32.mxu1 %vm1949_vm1, %v1948_v6  ;;  %v1833_v57 = vpop.eup %1832 }
 0x3b3   :  { %1774 = vmatprep.subr.mxu1 %v1948_v6  ;;  %v1521_v59 = vmul.f32 %v1833_v57, %v2146_v28 }
 0x3b5   :  { %1767 = vmatmul.mubr.msk.f32.vlgmr.msra.gmra.mxu1 %vm251_vm2, %v1351_v56 }
 0x3b6   :  { %1775 = vmatpush3.msra.mxu1 %v1523_v58  ;;  %1776 = vmatprep.mubr.msk.f32.mxu1 %vm1949_vm1, %v1948_v6 }
 0x3b9   :  { %1777 = vmatmul.mubr.msk.f32.vlgmr.msra.gmra.mxu1 %vm251_vm2, %v1521_v59 }
 0x430   :  { %v409_v60 = vpop.f32.mrf.mxu1 }
 0x431   :  { %413 = vst.msk [vmem:[#allocation10] sm:$0xff] %vm251_vm2, %v409_v60 }
 0x432   :  { %v1708_v61 = vpop.f32.mrf.mxu1 }
 0x434   :  { %v575_v62 = vpop.f32.mrf.mxu1 }
 0x435   :  { %580 = vrot.lane.b32.xlu0 %v575_v62, %s1945_s27 }
 0x436   :  { %v1718_v0 = vpop.f32.mrf.mxu1 }
 0x438   :  { %v746_v1 = vpop.f32.mrf.mxu1 }
 0x439   :  { %751 = vrot.lane.b32.xlu1 %v746_v1, %s1962_s30 }
 0x43a   :  { %v1728_v10 = vpop.f32.mrf.mxu1 }
 0x43c   :  { %v917_v2 = vpop.f32.mrf.mxu1 }
 0x43d   :  { %922 = vrot.lane.b32.xlu0 %v917_v2, %s1963_s7 }
 0x43e   :  { %v1738_v6 = vpop.f32.mrf.mxu1 }
 0x46d   :  { %v1087_v53 = vpop.f32.mrf.mxu1 }
 0x46e   :  { %1092 = vst.msk [vmem:[#allocation10 + $0x8] sm:$0xff] %vm251_vm2, %v1087_v53 }
 0x46f   :  { %v1748_v3 = vpop.f32.mrf.mxu1 }
 0x471   :  { %v1254_v4 = vpop.f32.mrf.mxu1 }
 0x472   :  { %1259 = vrot.lane.b32.xlu1 %v1254_v4, %s1945_s27 }
 0x473   :  { %v1758_v63 = vpop.f32.mrf.mxu1 }
 0x475   :  { %v1424_v5 = vpop.f32.mrf.mxu1 }
 0x476   :  { %1429 = vrot.lane.b32.xlu0 %v1424_v5, %s1962_s30 }
 0x477   :  { %v1768_v7 = vpop.f32.mrf.mxu1 }
 0x479   :  { %v1594_v8 = vpop.f32.mrf.mxu1 }
 0x47a   :  { %1599 = vrot.lane.b32.xlu1 %v1594_v8, %s1963_s7 }
 0x47b   :  { %v1778_v9 = vpop.f32.mrf.mxu1 }
 0x4a7   :  { %v581_v12 = vpop.permute.xlu0 %580 }
 0x4a8   :  { %584 = vst.msk [vmem:[#allocation10] sm:$0xff] %vm583_vm3, %v581_v12 }
 0x4ab   :  { %v752_v13 = vpop.permute.xlu1 %751 }
 0x4ac   :  { %755 = vst.msk [vmem:[#allocation10] sm:$0xff] %vm754_vm4, %v752_v13 }
 0x4af   :  { %v923_v14 = vpop.permute.xlu0 %922 }
 0x4b0   :  { %926 = vst.msk [vmem:[#allocation10] sm:$0xff] %vm925_vm5, %v923_v14 }
 0x4e4   :  { %v1260_v15 = vpop.permute.xlu1 %1259 }
 0x4e5   :  { %1262 = vst.msk [vmem:[#allocation10 + $0x8] sm:$0xff] %vm583_vm3, %v1260_v15 }
 0x4e8   :  { %v1430_v16 = vpop.permute.xlu0 %1429 }
 0x4e9   :  { %1432 = vst.msk [vmem:[#allocation10 + $0x8] sm:$0xff] %vm754_vm4, %v1430_v16 }
 0x4ec   :  { %v1600_v17 = vpop.permute.xlu1 %1599 }
 0x4ed   :  { %1602 = vst.msk [vmem:[#allocation10 + $0x8] sm:$0xff] %vm925_vm5, %v1600_v17 }
 0x4ee   :  { %1925 = shalt.err (!%p1922_p10)
}
 0x4ef   :  { %1614 = dma.vmem_to_hbm [thread:$0]  %s1609_s9, 256, %s2203_s6, [#allocation4], %s1944_s26, %s1944_s26, %s1945_s27  }
 0x4f0   :  { %1940 = dma.done.wait [#allocation4], 256  }
 0x4f1   :  { %1941 = vsyncadd [#allocation4], 4294967040 }
 0x4f2   :  { %1618 = vsyncpa [#allocation3], 1 }
 0x4f3   :  { %1619 = vsyncpa [#allocation6], 1 }
 0x4f4   :  { %1620 = vsyncpa [#allocation9], 1 }
 0x4f5   :  { %1621 = vsyncpa [#allocation4], 1 }

</bundles_post_ra>
